<compile_context>
chip_gen: v5e
topology: v5e:2x2
jax: 0.10.0
libtpu: 0.0.40
codegen_flags: <defaults>
</compile_context>

<pallas_src>
import functools
import math

import numpy as np
import jax
import jax.numpy as jnp
from jax.experimental import pallas as pl
from jax.experimental.pallas import tpu as pltpu


_MAX_GROUP = 32              # cap on the batch-row group factor (keeps concat count sane)
_OUT_BLOCK_BYTES = 4 << 20   # ~4 MiB output blocks: ~85%+ of HBM roofline per the
                             # measured tile sweep, fits v5e's 16 MiB scoped VMEM 2x-buffered.


def _round_up(x, mult):
    return ((x + mult - 1) // mult) * mult


def _choose_tile_r(R, W):
    """Rows per grid step: ~4 MiB output blocks, a multiple of 8 (sublane
    alignment for 2D blocks), and >=2 (even) grid steps so both v7x
    TensorCores get balanced work and the DMA pipeline double-buffers."""
    if R <= 8:
        return R
    target_rows = max(8, _OUT_BLOCK_BYTES // (W * 4))
    steps = max(2, -(-R // target_rows))
    if steps % 2:
        steps += 1                               # even split across the 2 TCs on v7x
    tile = _round_up(-(-R // steps), 8)
    return min(tile, R)


def _lane_tile(x, reps):
    """Tile `x` `reps` times along the last (lane) axis with O(log reps)
    exact lane concatenations (binary doubling).  Pure data movement: no MXU,
    no relayout-reshape, bit-exact."""
    if reps == 1:
        return x
    pieces = []
    doubled = x
    bit = 1
    while bit <= reps:
        if reps & bit:
            pieces.append(doubled)
        bit <<= 1
        if bit <= reps:
            doubled = jnp.concatenate([doubled, doubled], axis=-1)
    return pieces[0] if len(pieces) == 1 else jnp.concatenate(pieces, axis=-1)


def _make_concat_kernel(n, m, k):
    def kernel(x_ref, c_ref, g_ref, o_ref):
        # x_ref: (tile_r, k*n)   grouped input rows
        # c_ref, g_ref: (1, W)   centers / slopes tiled to the lane width
        # o_ref: (tile_r, W)     W = k*n*m (multiple of 128 when k was chosen)
        x = x_ref[...]
        groups = []
        for gi in range(k):
            xg = x[:, gi * n:(gi + 1) * n]        # static lane slice
            groups.append(_lane_tile(xg, m))      # exact in-register repeat(1, m)
        x_exp = groups[0] if k == 1 else jnp.concatenate(groups, axis=-1)
        z = g_ref[...] * (x_exp - c_ref[...])
        # sigmoid(z) = 0.5 * tanh(0.5 * z) + 0.5 : single EUP push per element.
        o_ref[...] = 0.5 * jnp.tanh(0.5 * z) + 0.5
    return kernel


@functools.partial(jax.jit, static_argnames=("n_memb",))
def _forward_concat(x, c, gamma, n_memb):
    x = jnp.asarray(x, jnp.float32)
    B, n = x.shape
    m = int(n_memb)
    nm = n * m

    # Smallest group factor k making the store lane width W = k*nm 128-aligned.
    k = 128 // math.gcd(nm, 128)
    if k > _MAX_GROUP:
        # Pathological nm (e.g. odd): stay ungrouped; stores are lane-masked but
        # the output HBM blocks remain large and contiguous.
        k = 1
    W = k * nm

    B_pad = _round_up(B, k)
    if B_pad != B:
        x = jnp.pad(x, ((0, B_pad - B), (0, 0)))
    R = B_pad // k
    x_grp = x.reshape(R, k * n)

    reps = W // m
    c_exp = jnp.tile(jnp.reshape(jnp.asarray(c, jnp.float32), (1, m)), (1, reps))
    g_exp = jnp.tile(jnp.reshape(jnp.asarray(gamma, jnp.float32), (1, m)), (1, reps))

    tile_r = _choose_tile_r(R, W)
    grid_r = pl.cdiv(R, tile_r)

    cost = pl.CostEstimate(
        flops=5 * B_pad * nm,
        transcendentals=B_pad * nm,
        bytes_accessed=4 * (B_pad * nm + B_pad * n + 2 * W),
    )

    out_slab = pl.pallas_call(
        _make_concat_kernel(n, m, k),
        out_shape=jax.ShapeDtypeStruct((R, W), jnp.float32),
        grid=(grid_r,),
        in_specs=[
            pl.BlockSpec((tile_r, k * n), lambda i: (i, 0)),
            pl.BlockSpec((1, W), lambda i: (0, 0)),
            pl.BlockSpec((1, W), lambda i: (0, 0)),
        ],
        out_specs=pl.BlockSpec((tile_r, W), lambda i: (i, 0)),
        compiler_params=pltpu.CompilerParams(
            dimension_semantics=("parallel",),      # shards row tiles across 2 TCs on v7x
            vmem_limit_bytes=32 * 1024 * 1024,
        ),
        cost_estimate=cost,
    )(x_grp, c_exp, g_exp)

    # Free row-major reshape back to the torch output shape, drop padded rows.
    out = out_slab.reshape(B_pad * n, m)
    if B_pad != B:
        out = out[: B * n]
    return out


def _broadcast_kernel(x_ref, c_ref, g_ref, o_ref):
    # x_ref: (tile_r, 1, n); c_ref, g_ref: (1, m, n); o_ref: (tile_r, m, n)
    z = g_ref[...] * (x_ref[...] - c_ref[...])
    o_ref[...] = 0.5 * jnp.tanh(0.5 * z) + 0.5


@functools.partial(jax.jit, static_argnames=("n_memb",))
def _forward_broadcast(x, c, gamma, n_memb):
    """Defensive fallback: the m-fold expansion becomes a pure sublane
    broadcast (second-minor 1 -> m); lanes = n so stores may be masked, but
    every op is a plain elementwise/broadcast op that always lowers."""
    x = jnp.asarray(x, jnp.float32)
    B, n = x.shape
    m = int(n_memb)

    idx = np.arange(m * n) % m                              # static table index
    c_tab = jnp.reshape(jnp.asarray(c, jnp.float32), (-1,))[idx].reshape(1, m, n)
    g_tab = jnp.reshape(jnp.asarray(gamma, jnp.float32), (-1,))[idx].reshape(1, m, n)

    x3 = x.reshape(B, 1, n)
    tile_r = _choose_tile_r(B, m * n)        # leading dim of 3D block: no 8-alignment needed
    grid_r = pl.cdiv(B, tile_r)

    cost = pl.CostEstimate(
        flops=5 * B * n * m,
        transcendentals=B * n * m,
        bytes_accessed=4 * (B * n * m + B * n + 2 * m * n),
    )

    out3 = pl.pallas_call(
        _broadcast_kernel,
        out_shape=jax.ShapeDtypeStruct((B, m, n), jnp.float32),
        grid=(grid_r,),
        in_specs=[
            pl.BlockSpec((tile_r, 1, n), lambda i: (i, 0, 0)),
            pl.BlockSpec((1, m, n), lambda i: (0, 0, 0)),
            pl.BlockSpec((1, m, n), lambda i: (0, 0, 0)),
        ],
        out_specs=pl.BlockSpec((tile_r, m, n), lambda i: (i, 0, 0)),
        compiler_params=pltpu.CompilerParams(
            dimension_semantics=("parallel",),
            vmem_limit_bytes=32 * 1024 * 1024,
        ),
        cost_estimate=cost,
    )(x3, c_tab, g_tab)

    return out3.reshape(B * n, m)


_force_fallback = False


def sigmoid_fuzzy_forward(x, c, gamma, n_memb):
    """Pallas equivalent of _SigmoidFuzzyLayer.forward.

    x: (B, n) float32, c / gamma: (1, m) float32  ->  (B*n, m) float32.
    """
    global _force_fallback
    if not _force_fallback:
        try:
            out = _forward_concat(x, c, gamma, int(n_memb))
            jax.block_until_ready(out)   # surface any Mosaic lowering issue here
            return out
        except Exception:
            # If the lane-concat expansion ever fails to lower for some (n, m),
            # switch to the pure-broadcast kernel (always lowers, narrower stores).
            _force_fallback = True
    return _forward_broadcast(x, c, gamma, int(n_memb))


if __name__ == "__main__":
    key = jax.random.PRNGKey(0)
    key_x1, key_x2 = jax.random.split(key)

    # Small shapes consistent with the module: 8 samples, 4 state variables,
    # 16 membership functions (c / gamma are the (1, m) layer parameters).
    B, n_vars, n_memb = 8, 4, 16
    x = jax.random.normal(key_x1, (B, n_vars), dtype=jnp.float32)
    c = jnp.linspace(-1.0, 1.0, n_memb, dtype=jnp.float32).reshape(1, n_memb)
    gamma = jnp.linspace(-2.5, 2.5, n_memb, dtype=jnp.float32).reshape(1, n_memb)

    def reference(xv):
        # Exact PyTorch semantics in pure JAX.
        return jax.nn.sigmoid(
            gamma * (jnp.tile(xv, (1, n_memb)).reshape(-1, n_memb) - c))

    out = sigmoid_fuzzy_forward(x, c, gamma, n_memb)
    out = jax.block_until_ready(out)
    ref = reference(x)
    assert out.shape == (B * n_vars, n_memb)
    assert out.dtype == jnp.float32
    err = float(jnp.max(jnp.abs(out - ref)))
    assert jnp.allclose(out, ref, atol=1e-5, rtol=1e-5), f"max abs err = {err}"

    # Second shape: odd batch exercises the row padding, >=2 grid steps and
    # the ragged last block.
    B2 = 1001
    x2 = jax.random.normal(key_x2, (B2, n_vars), dtype=jnp.float32)
    out2 = jax.block_until_ready(sigmoid_fuzzy_forward(x2, c, gamma, n_memb))
    ref2 = reference(x2)
    assert out2.shape == (B2 * n_vars, n_memb)
    err2 = float(jnp.max(jnp.abs(out2 - ref2)))
    assert jnp.allclose(out2, ref2, atol=1e-5, rtol=1e-5), f"max abs err = {err2}"

    print("KERNEL_OK")
</pallas_src>

<mosaic_0001>
module attributes {stable_mosaic.version = 11 : i64} {
  func.func @kernel(%arg0: i32, %arg1: memref<4x8xf32, #tpu.memory_space<vmem>>, %arg2: memref<1x128xf32, #tpu.memory_space<vmem>>, %arg3: memref<1x128xf32, #tpu.memory_space<vmem>>, %arg4: memref<4x128xf32, #tpu.memory_space<vmem>>) attributes {dimension_semantics = [#tpu.dimension_semantics<parallel>], iteration_bounds = array<i64: 1>, scalar_prefetch = 0 : i64, scratch_operands = 0 : i64, tpu.core_type = #tpu.core_type<tc>, window_params = [{transform_indices = @transform_0, window_bounds = array<i64: 4, 8>}, {pipeline_mode = #tpu.pipeline_mode<synchronous>, transform_indices = @transform_1, window_bounds = array<i64: 1, 128>}, {pipeline_mode = #tpu.pipeline_mode<synchronous>, transform_indices = @transform_2, window_bounds = array<i64: 1, 128>}, {transform_indices = @transform_3, window_bounds = array<i64: 4, 128>}]} {
    %c0 = arith.constant 0 : index
    %c0_0 = arith.constant 0 : index
    %0 = vector.load %arg1[%c0, %c0_0] : memref<4x8xf32, #tpu.memory_space<vmem>>, vector<4x8xf32>
    %1 = vector.extract_strided_slice %0 {offsets = [0, 0], sizes = [4, 4], strides = [1, 1]} : vector<4x8xf32> to vector<4x4xf32>
    %2 = tpu.concatenate %1, %1 in 1 : vector<4x4xf32>, vector<4x4xf32> -> vector<4x8xf32>
    %3 = tpu.concatenate %2, %2 in 1 : vector<4x8xf32>, vector<4x8xf32> -> vector<4x16xf32>
    %4 = tpu.concatenate %3, %3 in 1 : vector<4x16xf32>, vector<4x16xf32> -> vector<4x32xf32>
    %5 = tpu.concatenate %4, %4 in 1 : vector<4x32xf32>, vector<4x32xf32> -> vector<4x64xf32>
    %6 = vector.extract_strided_slice %0 {offsets = [0, 4], sizes = [4, 4], strides = [1, 1]} : vector<4x8xf32> to vector<4x4xf32>
    %7 = tpu.concatenate %6, %6 in 1 : vector<4x4xf32>, vector<4x4xf32> -> vector<4x8xf32>
    %8 = tpu.concatenate %7, %7 in 1 : vector<4x8xf32>, vector<4x8xf32> -> vector<4x16xf32>
    %9 = tpu.concatenate %8, %8 in 1 : vector<4x16xf32>, vector<4x16xf32> -> vector<4x32xf32>
    %10 = tpu.concatenate %9, %9 in 1 : vector<4x32xf32>, vector<4x32xf32> -> vector<4x64xf32>
    %11 = tpu.concatenate %5, %10 in 1 : vector<4x64xf32>, vector<4x64xf32> -> vector<4x128xf32>
    %c0_1 = arith.constant 0 : index
    %c0_2 = arith.constant 0 : index
    %12 = vector.load %arg3[%c0_1, %c0_2] : memref<1x128xf32, #tpu.memory_space<vmem>>, vector<1x128xf32>
    %c0_3 = arith.constant 0 : index
    %c0_4 = arith.constant 0 : index
    %13 = vector.load %arg2[%c0_3, %c0_4] : memref<1x128xf32, #tpu.memory_space<vmem>>, vector<1x128xf32>
    %14 = vector.broadcast %13 : vector<1x128xf32> to vector<4x128xf32>
    %15 = arith.subf %11, %14 : vector<4x128xf32>
    %16 = vector.broadcast %12 : vector<1x128xf32> to vector<4x128xf32>
    %17 = arith.mulf %16, %15 : vector<4x128xf32>
    %cst = arith.constant 5.000000e-01 : f32
    %18 = vector.broadcast %cst : f32 to vector<4x128xf32>
    %19 = arith.mulf %18, %17 : vector<4x128xf32>
    %20 = math.tanh %19 : vector<4x128xf32>
    %cst_5 = arith.constant 5.000000e-01 : f32
    %21 = vector.broadcast %cst_5 : f32 to vector<4x128xf32>
    %22 = arith.mulf %21, %20 : vector<4x128xf32>
    %cst_6 = arith.constant 5.000000e-01 : f32
    %23 = vector.broadcast %cst_6 : f32 to vector<4x128xf32>
    %24 = arith.addf %22, %23 : vector<4x128xf32>
    %c0_7 = arith.constant 0 : index
    %c0_8 = arith.constant 0 : index
    %25 = vector.load %arg4[%c0_7, %c0_8] : memref<4x128xf32, #tpu.memory_space<vmem>>, vector<4x128xf32>
    tpu.vector_store %arg4[%c0_7, %c0_8], %24 {strides = array<i32>} : memref<4x128xf32, #tpu.memory_space<vmem>>, vector<4x128xf32>,
    return
  }
  func.func @transform_0(%arg0: i32) -> (i32, i32) {
    %c0_i32 = arith.constant 0 : i32
    %c0_i32_0 = arith.constant 0 : i32
    return %arg0, %c0_i32 : i32, i32
  }
  func.func @transform_1(%arg0: i32) -> (i32, i32) {
    %c0_i32 = arith.constant 0 : i32
    %c0_i32_0 = arith.constant 0 : i32
    %c0_i32_1 = arith.constant 0 : i32
    return %c0_i32, %c0_i32_0 : i32, i32
  }
  func.func @transform_2(%arg0: i32) -> (i32, i32) {
    %c0_i32 = arith.constant 0 : i32
    %c0_i32_0 = arith.constant 0 : i32
    %c0_i32_1 = arith.constant 0 : i32
    return %c0_i32, %c0_i32_0 : i32, i32
  }
  func.func @transform_3(%arg0: i32) -> (i32, i32) {
    %c0_i32 = arith.constant 0 : i32
    %c0_i32_0 = arith.constant 0 : i32
    return %arg0, %c0_i32 : i32, i32
  }
}

module attributes {stable_mosaic.version = 11 : i64} {
  func.func @_broadcast_kernel(%arg0: i32, %arg1: memref<8x1x4xf32, #tpu.memory_space<vmem>>, %arg2: memref<1x16x4xf32, #tpu.memory_space<vmem>>, %arg3: memref<1x16x4xf32, #tpu.memory_space<vmem>>, %arg4: memref<8x16x4xf32, #tpu.memory_space<vmem>>) attributes {dimension_semantics = [#tpu.dimension_semantics<parallel>], iteration_bounds = array<i64: 1>, scalar_prefetch = 0 : i64, scratch_operands = 0 : i64, tpu.core_type = #tpu.core_type<tc>, window_params = [{transform_indices = @transform_0, window_bounds = array<i64: 8, 1, 4>}, {pipeline_mode = #tpu.pipeline_mode<synchronous>, transform_indices = @transform_1, window_bounds = array<i64: 1, 16, 4>}, {pipeline_mode = #tpu.pipeline_mode<synchronous>, transform_indices = @transform_2, window_bounds = array<i64: 1, 16, 4>}, {transform_indices = @transform_3, window_bounds = array<i64: 8, 16, 4>}]} {
    %c0 = arith.constant 0 : index
    %c0_0 = arith.constant 0 : index
    %c0_1 = arith.constant 0 : index
    %0 = vector.load %arg3[%c0, %c0_0, %c0_1] : memref<1x16x4xf32, #tpu.memory_space<vmem>>, vector<1x16x4xf32>
    %c0_2 = arith.constant 0 : index
    %c0_3 = arith.constant 0 : index
    %c0_4 = arith.constant 0 : index
    %1 = vector.load %arg1[%c0_2, %c0_3, %c0_4] : memref<8x1x4xf32, #tpu.memory_space<vmem>>, vector<8x1x4xf32>
    %c0_5 = arith.constant 0 : index
    %c0_6 = arith.constant 0 : index
    %c0_7 = arith.constant 0 : index
    %2 = vector.load %arg2[%c0_5, %c0_6, %c0_7] : memref<1x16x4xf32, #tpu.memory_space<vmem>>, vector<1x16x4xf32>
    %3 = vector.broadcast %1 : vector<8x1x4xf32> to vector<8x16x4xf32>
    %4 = vector.broadcast %2 : vector<1x16x4xf32> to vector<8x16x4xf32>
    %5 = arith.subf %3, %4 : vector<8x16x4xf32>
    %6 = vector.broadcast %0 : vector<1x16x4xf32> to vector<8x16x4xf32>
    %7 = arith.mulf %6, %5 : vector<8x16x4xf32>
    %cst = arith.constant 5.000000e-01 : f32
    %8 = vector.broadcast %cst : f32 to vector<8x16x4xf32>
    %9 = arith.mulf %8, %7 : vector<8x16x4xf32>
    %10 = math.tanh %9 : vector<8x16x4xf32>
    %cst_8 = arith.constant 5.000000e-01 : f32
    %11 = vector.broadcast %cst_8 : f32 to vector<8x16x4xf32>
    %12 = arith.mulf %11, %10 : vector<8x16x4xf32>
    %cst_9 = arith.constant 5.000000e-01 : f32
    %13 = vector.broadcast %cst_9 : f32 to vector<8x16x4xf32>
    %14 = arith.addf %12, %13 : vector<8x16x4xf32>
    %c0_10 = arith.constant 0 : index
    %c0_11 = arith.constant 0 : index
    %c0_12 = arith.constant 0 : index
    %15 = vector.load %arg4[%c0_10, %c0_11, %c0_12] : memref<8x16x4xf32, #tpu.memory_space<vmem>>, vector<8x16x4xf32>
    tpu.vector_store %arg4[%c0_10, %c0_11, %c0_12], %14 {strides = array<i32>} : memref<8x16x4xf32, #tpu.memory_space<vmem>>, vector<8x16x4xf32>,
    return
  }
  func.func @transform_0(%arg0: i32) -> (i32, i32, i32) {
    %c0_i32 = arith.constant 0 : i32
    %c0_i32_0 = arith.constant 0 : i32
    %c0_i32_1 = arith.constant 0 : i32
    return %arg0, %c0_i32, %c0_i32_0 : i32, i32, i32
  }
  func.func @transform_1(%arg0: i32) -> (i32, i32, i32) {
    %c0_i32 = arith.constant 0 : i32
    %c0_i32_0 = arith.constant 0 : i32
    %c0_i32_1 = arith.constant 0 : i32
    %c0_i32_2 = arith.constant 0 : i32
    return %c0_i32, %c0_i32_0, %c0_i32_1 : i32, i32, i32
  }
  func.func @transform_2(%arg0: i32) -> (i32, i32, i32) {
    %c0_i32 = arith.constant 0 : i32
    %c0_i32_0 = arith.constant 0 : i32
    %c0_i32_1 = arith.constant 0 : i32
    %c0_i32_2 = arith.constant 0 : i32
    return %c0_i32, %c0_i32_0, %c0_i32_1 : i32, i32, i32
  }
  func.func @transform_3(%arg0: i32) -> (i32, i32, i32) {
    %c0_i32 = arith.constant 0 : i32
    %c0_i32_0 = arith.constant 0 : i32
    %c0_i32_1 = arith.constant 0 : i32
    return %arg0, %c0_i32, %c0_i32_0 : i32, i32, i32
  }
}

</mosaic_0001>

<bundles_post_ra>
// kernel: _forward_concat.1
= control target key start
LH: loop header
LB: loop body
LE: loop exit
PB: predicated region body
PF: predicated region fallthrough
CT: control target
= control target key end

     0   :  { %s93_s14 = smov 124   ;;  %s94_s15 = smov 4   ;;  %vm19_vm0 = vcmask 31744   ;;  %vm25_vm1 = vcmask 64512   ;;  %vm31_vm2 = vcmask 130048   ;;  %vm37_vm3 = vcmask 261120   ;;  %s131_s0 = inlined_call_operand.vmem [shape: f32[4,8], index: 0, kind: input, shape index: {}]   ;;  %s132_s1 = inlined_call_operand.vmem [shape: f32[1,128], index: 1, kind: input, shape index: {}]   ;;  %s133_s2 = inlined_call_operand.vmem [shape: f32[1,128], index: 2, kind: input, shape index: {}]   ;;  %s134_s3 = inlined_call_operand.vmem [shape: f32[4,128], index: 3, kind: output, shape index: {}]  }
   0x1   :  { %v14_v0 = vld [vmem:[%s131_s0] sm:$0xf]  ;;  %s95_s16 = smov 8   ;;  %s96_s17 = smov 16   ;;  %vm62_vm4 = vcmask 523264  }
   0x2   :  { %39 = vrot.lane.b32.xlu0 %v14_v0, %s93_s14  ;;  %s97_s0 = smov 32   ;;  %s98_s18 = smov 64   ;;  %v89_v16 = vld [vmem:[%s132_s1] ss:$0 sm:$0xff] }
   0x3   :  { %v90_v18 = vld [vmem:[%s133_s2] ss:$0 sm:$0xff] }
   0xa   :  { %16 = vrot.lane.b32.xlu0 %v14_v0, %s94_s15 }
  0x74   :  { %v40_v1 = vpop.permute.xlu0 %39 }
  0x75   :  { %v42_v2 = vsel %vm19_vm0, %v40_v1, %v14_v0 }
  0x76   :  { %44 = vrot.lane.b32.xlu1 %v42_v2, %s95_s16 }
  0x7c   :  { %v17_v3 = vpop.permute.xlu0 %16 }
  0x7d   :  { %v20_v4 = vsel %vm19_vm0, %v14_v0, %v17_v3 }
  0x7e   :  { %22 = vrot.lane.b32.xlu1 %v20_v4, %s95_s16 }
  0xe8   :  { %v45_v5 = vpop.permute.xlu1 %44 }
  0xe9   :  { %v47_v6 = vsel %vm25_vm1, %v42_v2, %v45_v5 }
  0xea   :  { %49 = vrot.lane.b32.xlu2 %v47_v6, %s96_s17 }
  0xf0   :  { %v23_v7 = vpop.permute.xlu1 %22 }
  0xf1   :  { %v26_v8 = vsel %vm25_vm1, %v20_v4, %v23_v7 }
  0xf2   :  { %28 = vrot.lane.b32.xlu2 %v26_v8, %s96_s17 }
 0x144   :  { %v50_v9 = vpop.permute.xlu2 %49 }
 0x145   :  { %v52_v10 = vsel %vm31_vm2, %v47_v6, %v50_v9 }
 0x146   :  { %54 = vrot.lane.b32.xlu0 %v52_v10, %s97_s0 }
 0x14c   :  { %v29_v11 = vpop.permute.xlu2 %28 }
 0x14d   :  { %v32_v12 = vsel %vm31_vm2, %v26_v8, %v29_v11 }
 0x14e   :  { %34 = vrot.lane.b32.xlu1 %v32_v12, %s97_s0 }
 0x1b8   :  { %v55_v13 = vpop.permute.xlu0 %54 }
 0x1b9   :  { %v57_v14 = vsel %vm37_vm3, %v52_v10, %v55_v13 }
 0x1ba   :  { %59 = vrot.lane.b32.xlu2 %v57_v14, %s98_s18 }
 0x1c0   :  { %v35_v15 = vpop.permute.xlu1 %34 }
 0x1c1   :  { %v38_v17 = vsel %vm37_vm3, %v32_v12, %v35_v15 }
 0x214   :  { %v60_v19 = vpop.permute.xlu2 %59 }
 0x215   :  { %v63_v20 = vsel %vm62_vm4, %v38_v17, %v60_v19 }
 0x216   :  { %v69_v21 = vsub.f32 %v63_v20, %v89_v16 }
 0x218   :  { %v73_v22 = vmul.f32 %v90_v18, %v69_v21 }
 0x21a   :  { %v74_v23 = vmul.f32 0.5, %v73_v22 }
 0x21c   :  { %91 = vtanh.f32 %v74_v23 }
 0x222   :  { %v92_v24 = vpop.eup %91 }
 0x223   :  { %v76_v25 = vmul.f32 0.5, %v92_v24 }
 0x225   :  { %v77_v26 = vadd.f32 0.5, %v76_v25 }
 0x227   :  { %78 = vst [vmem:[%s134_s3] sm:$0xf] %v77_v26 }

// kernel: _forward_broadcast.1
= control target key start
LH: loop header
LB: loop body
LE: loop exit
PB: predicated region body
PF: predicated region fallthrough
CT: control target
= control target key end

     0   :  { %vm146_vm0 = vcmask 31744   ;;  %s367_s0 = inlined_call_operand.vmem [shape: f32[8,1,4], index: 0, kind: input, shape index: {}]   ;;  %s368_s1 = inlined_call_operand.vmem [shape: f32[1,16,4], index: 1, kind: input, shape index: {}]   ;;  %s369_s2 = inlined_call_operand.vmem [shape: f32[1,16,4], index: 2, kind: input, shape index: {}]   ;;  %s370_s3 = inlined_call_operand.vmem [shape: f32[8,16,4], index: 3, kind: output, shape index: {}]  }
   0x1   :  { %v230_v0 = vld [vmem:[%s369_s2] sm:$0xff]  ;;  %v243_v3 = vld [vmem:[%s369_s2 + $0x8] sm:$0xff] }
   0x2   :  { %v235_v1 = vld [vmem:[%s368_s1] sm:$0xff]  ;;  %v248_v4 = vld [vmem:[%s368_s1 + $0x8] sm:$0xff] }
   0x3   :  { %v167_v2 = vld [vmem:[%s367_s0] ss:$0 sm:$0xff]  ;;  %v168_v5 = vld [vmem:[%s367_s0 + $0x1] ss:$0 sm:$0xff]  ;;  %v169_v8 = vld [vmem:[%s367_s0 + $0x2] ss:$0 sm:$0xff] }
   0x4   :  { %v50_v6 = vsub.f32 %v167_v2, %v235_v1  ;;  %v51_v7 = vsub.f32 %v167_v2, %v248_v4  ;;  %v170_v9 = vld [vmem:[%s367_s0 + $0x3] ss:$0 sm:$0xff]  ;;  %v52_v10 = vsub.f32 %v168_v5, %v235_v1  ;;  %v53_v11 = vsub.f32 %v168_v5, %v248_v4  ;;  %v171_v16 = vld [vmem:[%s367_s0 + $0x4] ss:$0 sm:$0xff]  ;;  %v172_v25 = vld [vmem:[%s367_s0 + $0x5] ss:$0 sm:$0xff] }
   0x5   :  { %v54_v14 = vsub.f32 %v169_v8, %v235_v1  ;;  %v55_v15 = vsub.f32 %v169_v8, %v248_v4  ;;  %v56_v19 = vsub.f32 %v170_v9, %v235_v1  ;;  %v57_v20 = vsub.f32 %v170_v9, %v248_v4  ;;  %v173_v30 = vld [vmem:[%s367_s0 + $0x6] ss:$0 sm:$0xff]  ;;  %v174_v40 = vld [vmem:[%s367_s0 + $0x7] ss:$0 sm:$0xff] }
   0x6   :  { %v66_v12 = vmul.f32 %v50_v6, %v230_v0  ;;  %v67_v13 = vmul.f32 %v51_v7, %v243_v3  ;;  %v68_v17 = vmul.f32 %v52_v10, %v230_v0  ;;  %v69_v18 = vmul.f32 %v53_v11, %v243_v3 }
   0x7   :  { %v70_v23 = vmul.f32 %v54_v14, %v230_v0  ;;  %v71_v24 = vmul.f32 %v55_v15, %v243_v3  ;;  %v72_v28 = vmul.f32 %v56_v19, %v230_v0  ;;  %v73_v29 = vmul.f32 %v57_v20, %v243_v3 }
   0x8   :  { %v82_v21 = vmul.f32 0.5, %v66_v12  ;;  %v83_v22 = vmul.f32 0.5, %v67_v13  ;;  %v84_v26 = vmul.f32 0.5, %v68_v17  ;;  %v85_v27 = vmul.f32 0.5, %v69_v18 }
   0x9   :  { %v86_v31 = vmul.f32 0.5, %v70_v23  ;;  %v87_v32 = vmul.f32 0.5, %v71_v24  ;;  %v58_v33 = vsub.f32 %v171_v16, %v235_v1  ;;  %v88_v34 = vmul.f32 0.5, %v72_v28 }
   0xa   :  { %175 = vtanh.f32 %v82_v21  ;;  %v89_v35 = vmul.f32 0.5, %v73_v29  ;;  %v59_v36 = vsub.f32 %v171_v16, %v248_v4  ;;  %v60_v38 = vsub.f32 %v172_v25, %v235_v1 }
   0xb   :  { %177 = vtanh.f32 %v83_v22  ;;  %v74_v37 = vmul.f32 %v58_v33, %v230_v0  ;;  %v61_v39 = vsub.f32 %v172_v25, %v248_v4  ;;  %v62_v42 = vsub.f32 %v173_v30, %v235_v1 }
   0xc   :  { %179 = vtanh.f32 %v84_v26  ;;  %v75_v41 = vmul.f32 %v59_v36, %v243_v3  ;;  %v63_v43 = vsub.f32 %v173_v30, %v248_v4  ;;  %v76_v45 = vmul.f32 %v60_v38, %v230_v0 }
   0xd   :  { %181 = vtanh.f32 %v85_v27  ;;  %v90_v44 = vmul.f32 0.5, %v74_v37  ;;  %v77_v46 = vmul.f32 %v61_v39, %v243_v3  ;;  %v78_v48 = vmul.f32 %v62_v42, %v230_v0 }
   0xe   :  { %183 = vtanh.f32 %v86_v31  ;;  %v91_v47 = vmul.f32 0.5, %v75_v41  ;;  %v79_v49 = vmul.f32 %v63_v43, %v243_v3  ;;  %v92_v51 = vmul.f32 0.5, %v76_v45 }
   0xf   :  { %185 = vtanh.f32 %v87_v32  ;;  %v64_v52 = vsub.f32 %v174_v40, %v235_v1  ;;  %v93_v55 = vmul.f32 0.5, %v77_v46  ;;  %v94_v56 = vmul.f32 0.5, %v78_v48 }
  0x10   :  { %v176_v50 = vpop.eup %175  ;;  %187 = vtanh.f32 %v88_v34  ;;  %v65_v60 = vsub.f32 %v174_v40, %v248_v4  ;;  %v95_v2 = vmul.f32 0.5, %v79_v49 }
  0x11   :  { %v178_v53 = vpop.eup %177  ;;  %v114_v54 = vmul.f32 0.5, %v176_v50  ;;  %189 = vtanh.f32 %v89_v35  ;;  %v80_v59 = vmul.f32 %v64_v52, %v230_v0 }
  0x12   :  { %v180_v57 = vpop.eup %179  ;;  %v115_v58 = vmul.f32 0.5, %v178_v53  ;;  %191 = vtanh.f32 %v90_v44  ;;  %v81_v4 = vmul.f32 %v65_v60, %v243_v3 }
  0x13   :  { %v182_v61 = vpop.eup %181  ;;  %v130_v62 = vadd.f32 0.5, %v114_v54  ;;  %v116_v63 = vmul.f32 0.5, %v180_v57  ;;  %193 = vtanh.f32 %v91_v47  ;;  %v96_v7 = vmul.f32 0.5, %v80_v59 }
  0x14   :  { %v184_v5 = vpop.eup %183  ;;  %v131_v6 = vadd.f32 0.5, %v115_v58  ;;  %v117_v1 = vmul.f32 0.5, %v182_v61  ;;  %195 = vtanh.f32 %v92_v51  ;;  %v97_v16 = vmul.f32 0.5, %v81_v4 }
  0x15   :  { %v186_v8 = vpop.eup %185  ;;  %147 = vst.msk [vmem:[%s370_s3] sm:$0xff] %vm146_vm0, %v130_v62  ;;  %v132_v9 = vadd.f32 0.5, %v116_v63  ;;  %v118_v0 = vmul.f32 0.5, %v184_v5  ;;  %197 = vtanh.f32 %v93_v55 }
  0x16   :  { %v188_v10 = vpop.eup %187  ;;  %148 = vst.msk [vmem:[%s370_s3 + $0x8] sm:$0xff] %vm146_vm0, %v131_v6  ;;  %v133_v11 = vadd.f32 0.5, %v117_v1  ;;  %v119_v12 = vmul.f32 0.5, %v186_v8  ;;  %199 = vtanh.f32 %v94_v56 }
  0x17   :  { %v190_v13 = vpop.eup %189  ;;  %149 = vst.msk [vmem:[%s370_s3 + $0x10] sm:$0xff] %vm146_vm0, %v132_v9  ;;  %v134_v14 = vadd.f32 0.5, %v118_v0  ;;  %v120_v15 = vmul.f32 0.5, %v188_v10  ;;  %201 = vtanh.f32 %v95_v2 }
  0x18   :  { %v192_v3 = vpop.eup %191  ;;  %150 = vst.msk [vmem:[%s370_s3 + $0x18] sm:$0xff] %vm146_vm0, %v133_v11  ;;  %v135_v17 = vadd.f32 0.5, %v119_v12  ;;  %v121_v18 = vmul.f32 0.5, %v190_v13  ;;  %203 = vtanh.f32 %v96_v7 }
  0x19   :  { %v194_v19 = vpop.eup %193  ;;  %151 = vst.msk [vmem:[%s370_s3 + $0x20] sm:$0xff] %vm146_vm0, %v134_v14  ;;  %v136_v20 = vadd.f32 0.5, %v120_v15  ;;  %v122_v21 = vmul.f32 0.5, %v192_v3  ;;  %205 = vtanh.f32 %v97_v16 }
  0x1a   :  { %v196_v22 = vpop.eup %195  ;;  %152 = vst.msk [vmem:[%s370_s3 + $0x28] sm:$0xff] %vm146_vm0, %v135_v17  ;;  %v137_v23 = vadd.f32 0.5, %v121_v18  ;;  %v123_v24 = vmul.f32 0.5, %v194_v19 }
  0x1b   :  { %v198_v25 = vpop.eup %197  ;;  %153 = vst.msk [vmem:[%s370_s3 + $0x30] sm:$0xff] %vm146_vm0, %v136_v20  ;;  %v138_v26 = vadd.f32 0.5, %v122_v21  ;;  %v124_v27 = vmul.f32 0.5, %v196_v22 }
  0x1c   :  { %v200_v28 = vpop.eup %199  ;;  %154 = vst.msk [vmem:[%s370_s3 + $0x38] sm:$0xff] %vm146_vm0, %v137_v23  ;;  %v139_v29 = vadd.f32 0.5, %v123_v24  ;;  %v125_v30 = vmul.f32 0.5, %v198_v25 }
  0x1d   :  { %v202_v31 = vpop.eup %201  ;;  %155 = vst.msk [vmem:[%s370_s3 + $0x40] sm:$0xff] %vm146_vm0, %v138_v26  ;;  %v140_v32 = vadd.f32 0.5, %v124_v27  ;;  %v126_v33 = vmul.f32 0.5, %v200_v28 }
  0x1e   :  { %v204_v34 = vpop.eup %203  ;;  %156 = vst.msk [vmem:[%s370_s3 + $0x48] sm:$0xff] %vm146_vm0, %v139_v29  ;;  %v141_v35 = vadd.f32 0.5, %v125_v30  ;;  %v127_v36 = vmul.f32 0.5, %v202_v31 }
  0x1f   :  { %v206_v37 = vpop.eup %205  ;;  %157 = vst.msk [vmem:[%s370_s3 + $0x50] sm:$0xff] %vm146_vm0, %v140_v32  ;;  %v142_v38 = vadd.f32 0.5, %v126_v33  ;;  %v128_v39 = vmul.f32 0.5, %v204_v34 }
  0x20   :  { %158 = vst.msk [vmem:[%s370_s3 + $0x58] sm:$0xff] %vm146_vm0, %v141_v35  ;;  %v143_v40 = vadd.f32 0.5, %v127_v36  ;;  %v129_v41 = vmul.f32 0.5, %v206_v37 }
  0x21   :  { %159 = vst.msk [vmem:[%s370_s3 + $0x60] sm:$0xff] %vm146_vm0, %v142_v38  ;;  %v144_v42 = vadd.f32 0.5, %v128_v39 }
  0x22   :  { %160 = vst.msk [vmem:[%s370_s3 + $0x68] sm:$0xff] %vm146_vm0, %v143_v40  ;;  %v145_v43 = vadd.f32 0.5, %v129_v41 }
  0x23   :  { %161 = vst.msk [vmem:[%s370_s3 + $0x70] sm:$0xff] %vm146_vm0, %v144_v42 }
  0x24   :  { %162 = vst.msk [vmem:[%s370_s3 + $0x78] sm:$0xff] %vm146_vm0, %v145_v43 }

</bundles_post_ra>
